<compile_context>
chip_gen: v6e
topology: v6e:2x2x1
jax: 0.10.0
libtpu: 0.0.40
codegen_flags: <defaults>
</compile_context>

<pallas_src>
import math

import jax
import jax.numpy as jnp
from jax.experimental import pallas as pl
from jax.experimental.pallas import tpu as pltpu


def _pos_emb_kernel(boxes_ref, feat_ref, scale_ref, phase_ref, out_ref):
    """One row tile: out = sin(center * scale + phase) + feature, full lane width."""
    _, C = out_ref.shape
    F = C // 2

    boxes = boxes_ref[...].astype(jnp.float32)               # (tm, 4)
    sum_x = boxes[:, 0:1] + boxes[:, 2:3]                    # (tm, 1) = x1 + x2
    sum_y = boxes[:, 1:2] + boxes[:, 3:4]                    # (tm, 1) = y1 + y2

    # First F lanes carry the x-center, last F lanes the y-center.
    col = jax.lax.broadcasted_iota(jnp.int32, (1, C), 1)
    center = jnp.where(col < F, sum_x, sum_y)                # (tm, C)

    # scale_ref folds 0.5 * (image/out rescale) * (1/dim_t); phase_ref is
    # (j%2)*pi/2 so even lanes give sin and odd lanes give cos -- one EUP op.
    pos = jnp.sin(center * scale_ref[...] + phase_ref[...])  # (tm, C)

    out = pos + feat_ref[...].astype(jnp.float32)
    out_ref[...] = out.astype(out_ref.dtype)


def _round_up(a, b):
    return (a + b - 1) // b * b


# VMEM budget for the double-buffered feature-in / out / boxes blocks; leaves
# headroom under the 32 MiB scoped limit set below (valid on v5e/v6e/v7x).
_VMEM_BLOCK_BUDGET = 20 << 20
_VMEM_LIMIT_BYTES = 32 << 20


def embfeature_position_embedding(
    feature,
    boxes_in_flat,
    *,
    image_size,
    out_size,
    num_pos_feats,
    temperature=10000.0,
    tm=8192,
):
    M, C = feature.shape
    assert C == 2 * num_pos_feats, "num_pos_feats * 2 must equal feature.shape[1]"
    F = num_pos_feats
    itemsize = jnp.dtype(feature.dtype).itemsize

    # ---- constant setup (wrapper side, not the hot path) -------------------
    i = jnp.arange(F, dtype=jnp.float32)
    dim_t = temperature ** (2.0 * jnp.floor(i / 2.0) / F)
    inv_dim_t = 1.0 / dim_t                                   # exact reciprocal
    phase_half = (jnp.arange(F) % 2).astype(jnp.float32) * (math.pi / 2.0)

    scale_x = 0.5 * float(image_size[1]) / float(out_size[1])
    scale_y = 0.5 * float(image_size[0]) / float(out_size[0])
    # (1, 2F) lane-dense constants: first F lanes for x, last F lanes for y.
    scale_c = jnp.concatenate([scale_x * inv_dim_t, scale_y * inv_dim_t]).reshape(1, C)
    phase_c = jnp.concatenate([phase_half, phase_half]).reshape(1, C)

    # ---- tile choice: no padding, ragged last block handled by Pallas ------
    # Per-row VMEM cost (double-buffered): feature in + out + boxes.
    per_row = 2 * (2 * C * itemsize) + 2 * (4 * 4)
    tm_eff = min(int(tm), max(16, _VMEM_BLOCK_BUDGET // per_row))
    # Keep >= 2 grid steps so both v7x TensorCores get work.
    tm_eff = min(tm_eff, max(16, _round_up(pl.cdiv(M, 2), 16)))
    tm_eff = max(16, (tm_eff // 16) * 16)      # multiple of 16 (f32 and bf16 safe)
    if M <= tm_eff:
        tm_eff = M                              # single full-extent block
    grid = (pl.cdiv(M, tm_eff),)

    cost = pl.CostEstimate(
        flops=4 * M * C,
        transcendentals=M * C,
        bytes_accessed=2 * M * C * itemsize + M * 4 * 4,
    )

    return pl.pallas_call(
        _pos_emb_kernel,
        out_shape=jax.ShapeDtypeStruct((M, C), feature.dtype),
        grid_spec=pltpu.PrefetchScalarGridSpec(
            num_scalar_prefetch=0,
            grid=grid,
            in_specs=[
                pl.BlockSpec((tm_eff, 4), lambda r: (r, 0)),   # boxes
                pl.BlockSpec((tm_eff, C), lambda r: (r, 0)),   # feature
                pl.BlockSpec((1, C), lambda r: (0, 0)),        # scale const (resident)
                pl.BlockSpec((1, C), lambda r: (0, 0)),        # phase const (resident)
            ],
            out_specs=pl.BlockSpec((tm_eff, C), lambda r: (r, 0)),
        ),
        compiler_params=pltpu.CompilerParams(
            dimension_semantics=("parallel",),
            vmem_limit_bytes=_VMEM_LIMIT_BYTES,
        ),
        cost_estimate=cost,
    )(boxes_in_flat, feature, scale_c, phase_c)


def reference_forward(feature, boxes, image_size, out_size, num_pos_feats, temperature):
    """Pure-JAX transcription of the PyTorch forward for correctness checking."""
    feature = feature.astype(jnp.float32)
    boxes = boxes.astype(jnp.float32)
    cx = (boxes[:, 0] + boxes[:, 2]) / 2.0 * image_size[1] / out_size[1]
    cy = (boxes[:, 1] + boxes[:, 3]) / 2.0 * image_size[0] / out_size[0]
    i = jnp.arange(num_pos_feats, dtype=jnp.float32)
    dim_t = temperature ** (2.0 * jnp.floor(i / 2.0) / num_pos_feats)
    px = cx[:, None] / dim_t
    py = cy[:, None] / dim_t
    px = jnp.stack([jnp.sin(px[:, 0::2]), jnp.cos(px[:, 1::2])], axis=2).reshape(
        px.shape[0], -1
    )
    py = jnp.stack([jnp.sin(py[:, 0::2]), jnp.cos(py[:, 1::2])], axis=2).reshape(
        py.shape[0], -1
    )
    pos_emb = jnp.concatenate([px, py], axis=1)
    return pos_emb + feature


if __name__ == "__main__":
    # cfg-equivalent constants (this module has no learnable parameters)
    IMAGE_SIZE = (480.0, 720.0)   # (H, W) in pixels
    OUT_SIZE = (57.0, 87.0)       # feature-map grid size
    NUM_POS_FEATS = 64            # -> feature channel dim = 128
    TEMPERATURE = 10000.0

    key = jax.random.PRNGKey(0)

    def run_case(M, key, dtype=jnp.float32, atol=1e-3):
        C = 2 * NUM_POS_FEATS
        k_feat, k_box = jax.random.split(key)
        feature = jax.random.normal(k_feat, (M, C), dtype=jnp.float32).astype(dtype)
        boxes = jax.random.uniform(
            k_box, (M, 4), dtype=jnp.float32, minval=0.0, maxval=float(OUT_SIZE[1])
        )
        out = embfeature_position_embedding(
            feature,
            boxes,
            image_size=IMAGE_SIZE,
            out_size=OUT_SIZE,
            num_pos_feats=NUM_POS_FEATS,
            temperature=TEMPERATURE,
        )
        out = jax.block_until_ready(out)
        ref = jax.block_until_ready(
            reference_forward(feature, boxes, IMAGE_SIZE, OUT_SIZE,
                              NUM_POS_FEATS, TEMPERATURE)
        )
        assert out.shape == feature.shape and out.dtype == feature.dtype
        if not jnp.allclose(out.astype(jnp.float32), ref, rtol=1e-4, atol=atol):
            max_err = float(jnp.max(jnp.abs(out.astype(jnp.float32) - ref)))
            raise AssertionError(
                f"M={M} dtype={dtype}: mismatch vs reference, max abs err = {max_err}"
            )

    k1, k2, k3 = jax.random.split(key, 3)
    run_case(2 * 2 * 8, k1)                          # M=32  -> evenly tiled grid
    run_case(50, k2)                                 # M=50  -> ragged last block (no padding)
    run_case(32, k3, dtype=jnp.bfloat16, atol=5e-2)  # bf16 feature path

    print("KERNEL_OK")
</pallas_src>

<mosaic_0001>
module attributes {stable_mosaic.version = 11 : i64} {
  func.func @_pos_emb_kernel(%arg0: i32, %arg1: memref<16x4xf32, #tpu.memory_space<vmem>>, %arg2: memref<16x128xf32, #tpu.memory_space<vmem>>, %arg3: memref<1x128xf32, #tpu.memory_space<vmem>>, %arg4: memref<1x128xf32, #tpu.memory_space<vmem>>, %arg5: memref<16x128xf32, #tpu.memory_space<vmem>>) attributes {dimension_semantics = [#tpu.dimension_semantics<parallel>], iteration_bounds = array<i64: 2>, scalar_prefetch = 0 : i64, scratch_operands = 0 : i64, tpu.core_type = #tpu.core_type<tc>, window_params = [{transform_indices = @transform_0, window_bounds = array<i64: 16, 4>}, {transform_indices = @transform_1, window_bounds = array<i64: 16, 128>}, {pipeline_mode = #tpu.pipeline_mode<synchronous>, transform_indices = @transform_2, window_bounds = array<i64: 1, 128>}, {pipeline_mode = #tpu.pipeline_mode<synchronous>, transform_indices = @transform_3, window_bounds = array<i64: 1, 128>}, {transform_indices = @transform_4, window_bounds = array<i64: 16, 128>}]} {
    %c0 = arith.constant 0 : index
    %c0_0 = arith.constant 0 : index
    %0 = vector.load %arg1[%c0, %c0_0] : memref<16x4xf32, #tpu.memory_space<vmem>>, vector<16x4xf32>
    %1 = vector.extract_strided_slice %0 {offsets = [0, 0], sizes = [16, 1], strides = [1, 1]} : vector<16x4xf32> to vector<16x1xf32>
    %2 = vector.extract_strided_slice %0 {offsets = [0, 2], sizes = [16, 1], strides = [1, 1]} : vector<16x4xf32> to vector<16x1xf32>
    %3 = arith.addf %1, %2 : vector<16x1xf32>
    %4 = vector.extract_strided_slice %0 {offsets = [0, 1], sizes = [16, 1], strides = [1, 1]} : vector<16x4xf32> to vector<16x1xf32>
    %5 = vector.extract_strided_slice %0 {offsets = [0, 3], sizes = [16, 1], strides = [1, 1]} : vector<16x4xf32> to vector<16x1xf32>
    %6 = arith.addf %4, %5 : vector<16x1xf32>
    %7 = tpu.iota {dimensions = array<i32: 1>} : vector<1x128xi32>
    %c64_i32 = arith.constant 64 : i32
    %8 = vector.broadcast %c64_i32 : i32 to vector<1x128xi32>
    %9 = arith.cmpi slt, %7, %8 : vector<1x128xi32>
    %10 = vector.shape_cast %9 : vector<1x128xi1> to vector<1x128xi1>
    %11 = vector.broadcast %10 : vector<1x128xi1> to vector<16x128xi1>
    %12 = vector.shape_cast %3 : vector<16x1xf32> to vector<16x1xf32>
    %13 = vector.broadcast %12 : vector<16x1xf32> to vector<16x128xf32>
    %14 = vector.shape_cast %6 : vector<16x1xf32> to vector<16x1xf32>
    %15 = vector.broadcast %14 : vector<16x1xf32> to vector<16x128xf32>
    %16 = arith.select %11, %13, %15 : vector<16x128xi1>, vector<16x128xf32>
    %c0_1 = arith.constant 0 : index
    %c0_2 = arith.constant 0 : index
    %17 = vector.load %arg3[%c0_1, %c0_2] : memref<1x128xf32, #tpu.memory_space<vmem>>, vector<1x128xf32>
    %18 = vector.broadcast %17 : vector<1x128xf32> to vector<16x128xf32>
    %19 = arith.mulf %16, %18 : vector<16x128xf32>
    %c0_3 = arith.constant 0 : index
    %c0_4 = arith.constant 0 : index
    %20 = vector.load %arg4[%c0_3, %c0_4] : memref<1x128xf32, #tpu.memory_space<vmem>>, vector<1x128xf32>
    %21 = vector.broadcast %20 : vector<1x128xf32> to vector<16x128xf32>
    %22 = arith.addf %19, %21 : vector<16x128xf32>
    %23 = math.sin %22 : vector<16x128xf32>
    %c0_5 = arith.constant 0 : index
    %c0_6 = arith.constant 0 : index
    %24 = vector.load %arg2[%c0_5, %c0_6] : memref<16x128xf32, #tpu.memory_space<vmem>>, vector<16x128xf32>
    %25 = arith.addf %23, %24 : vector<16x128xf32>
    %c0_7 = arith.constant 0 : index
    %c0_8 = arith.constant 0 : index
    %26 = vector.load %arg5[%c0_7, %c0_8] : memref<16x128xf32, #tpu.memory_space<vmem>>, vector<16x128xf32>
    tpu.vector_store %arg5[%c0_7, %c0_8], %25 {strides = array<i32>} : memref<16x128xf32, #tpu.memory_space<vmem>>, vector<16x128xf32>,
    return
  }
  func.func @transform_0(%arg0: i32) -> (i32, i32) {
    %c0_i32 = arith.constant 0 : i32
    %c0_i32_0 = arith.constant 0 : i32
    return %arg0, %c0_i32 : i32, i32
  }
  func.func @transform_1(%arg0: i32) -> (i32, i32) {
    %c0_i32 = arith.constant 0 : i32
    %c0_i32_0 = arith.constant 0 : i32
    return %arg0, %c0_i32 : i32, i32
  }
  func.func @transform_2(%arg0: i32) -> (i32, i32) {
    %c0_i32 = arith.constant 0 : i32
    %c0_i32_0 = arith.constant 0 : i32
    %c0_i32_1 = arith.constant 0 : i32
    return %c0_i32, %c0_i32_0 : i32, i32
  }
  func.func @transform_3(%arg0: i32) -> (i32, i32) {
    %c0_i32 = arith.constant 0 : i32
    %c0_i32_0 = arith.constant 0 : i32
    %c0_i32_1 = arith.constant 0 : i32
    return %c0_i32, %c0_i32_0 : i32, i32
  }
  func.func @transform_4(%arg0: i32) -> (i32, i32) {
    %c0_i32 = arith.constant 0 : i32
    %c0_i32_0 = arith.constant 0 : i32
    return %arg0, %c0_i32 : i32, i32
  }
}

</mosaic_0001>

<bundles_post_ra>
// kernel: tpu_custom_call.1
= control target key start
LH: loop header
LB: loop body
LE: loop exit
PB: predicated region body
PF: predicated region fallthrough
CT: control target
= control target key end

     0   :  { %9 = vsyncpa [#allocation3], 0  ;;  %s977_s0 = inlined_call_operand.vmem [shape: f32[32,4], index: 0, kind: input, shape index: {}]   ;;  %s978_s1 = inlined_call_operand.vmem [shape: f32[32,128], index: 1, kind: input, shape index: {}]   ;;  %s979_s2 = inlined_call_operand.vmem [shape: f32[1,128], index: 2, kind: input, shape index: {}]   ;;  %s980_s3 = inlined_call_operand.vmem [shape: f32[1,128], index: 3, kind: input, shape index: {}]   ;;  %s981_s4 = inlined_call_operand.hbm [shape: f32[32,128], index: 4, kind: output, shape index: {}]  }
   0x1   :  { %11 = vsyncpa [#allocation3 + $0x1], 0  ;;  %s771_s15 = smov 0   ;;  %s773_s16 = smov 0  }
   0x2   :  { %s775_s17 = smov 0   ;;  %s777_s18 = smov 0  }
   0x3 LB: > { %s792_s19 = sadd.s32 4294967295, %s732_s18   ;;  %s578_s20 = sadd.s32 4294967294, %s732_s18   ;;  %s732_s18 = sphi %s777_s18, %s991_s18   ;;  %s728_s17 = sphi %s775_s17, %s990_s17   ;;  %s724_s16 = sphi %s773_s16, %s989_s16   ;;  %s720_s15 = sphi %s771_s15, %s988_s15  }
   0x4   : > { %s796_s21 = sadd.s32 1, %s732_s18   ;;  %s118_s22 = sadd.s32 1, %s728_s17 }
   0x5   : > { %s115_s23 = ssub.s32 %s732_s18, %s796_s21  ;;  %p128_p0 = scmp.ne.s32.totalorder %s728_s17, %s724_s16 }
   0x6   : > { %p116_p1 = scmp.eq.s32.totalorder %s115_s23, 0  ;;  %p129_p2 = scmp.eq.s32.totalorder %s792_s19, 1 }
   0x7   : > { %p134_p3 = scmp.ne.s32.totalorder %s724_s16, %s720_s15  ;;  %p135_p4 = scmp.eq.s32.totalorder %s578_s20, 1 }
   0x8   : > { %s807_s24 = scalar_select %p116_p1, %s728_s17, %s118_s22  }
   0x9   : > { %p809_p5 = por %p129_p2, %p128_p0  ;;  %p813_p6 = por %p135_p4, %p134_p3 }
   0xa   : > { %p581_p7 = scmp.ge.s32.totalorder %s732_s18, 1  ;;  %p177_p8 = scmp.lt.s32.totalorder %s732_s18, 3 }
   0xc   : > { %p178_p9 = pnand %p581_p7, %p177_p8 }
   0xd   : > { %s583_s27 = sshll.u32 (!%p178_p9), %s792_s19, 1  ;;  %s736_s6 = smov (!%p178_p9), 126  }
   0xe   : > { %181 = sbr.rel (%p178_p9) target bundleno = 380 (0x17c), region = 36  ;;  %p209_p10 = scmp.lt.s32.totalorder (!%p178_p9), %s583_s27, 3 }
   0xf   : > { %s205_s11 = sand.u32 (!%p178_p9), 1, %s724_s16   ;;  %s602_s23 = sshll.u32 (!%p178_p9), %s792_s19, 8 }
  0x10   : > { %s582_s20 = sshll.u32 (!%p178_p9), %s205_s11, 4  ;;  %s931_s30 = scalar_lea.hbm (!%p178_p9), %s981_s4, %s602_s23 }
  0x11   : > { %s207_s22 = scalar_lea.vmem (!%p178_p9), [#allocation2], %s582_s20  ;;  %s937_s19 = scalar_lea.sflag (!%p178_p9), [#allocation3], %s205_s11 }
  0x13   : > { %v734_v0 = vmov 1   ;;  %v735_v1 = vmov 0   ;;  %s993_s27 = smov (!%p209_p10, %s583_s27), 3  ;;  %v233_v8 = vlaneseq  ;;  %v587_v10 = vld [vmem:[%s979_s2] ss:$0 sm:$0xff] }
  0x14   : > { %662 = vset.pattern.permute.xlu0 %v734_v0  ;;  %661 = vset.pattern.permute.xlu1 %v735_v1  ;;  %s584_s28 = sshll.u32 %s993_s27, 3  ;;  %v588_v13 = vld [vmem:[%s980_s3] ss:$0 sm:$0xff]  ;;  %v737_v37 = vmov 683565275   ;;  %s504_s27 = sshll.u32 %s207_s22, 4  ;;  %s933_s27 = int_to_ptr.vmem [resolvable:$true] %s504_s27 }
  0x15   : > { %s212_s5 = scalar_lea.vmem %s977_s0, %s584_s28  ;;  %v234_v9 = vand.u32 127, %v233_v8  ;;  %v738_v39 = vmov 2475754826   ;;  %v739_v41 = vmov 2131351028   ;;  %s914_s14 = scalar_lea.vmem %s978_s1, %s584_s28 }
  0x16   : > { %v221_v2 = vld [vmem:[%s212_s5] sm:$0xff]  ;;  %v222_v3 = vld [vmem:[%s212_s5 + $0x8] sm:$0xff]  ;;  %v740_v46 = vmov 2102212464   ;;  %v741_v49 = vmov 920167782  }
  0x17   : > { %225 = vrot.lane.b32.xlu0 %v221_v2, %s736_s6  ;;  %vm235_vm0 = vcmp.lt.s32.totalorder %v234_v9, 64  ;;  %v742_v52 = vmov 1326507024   ;;  %s672_s5 = scalar_lea.vmem %s933_s27, 256 }
  0x18   : > { %p673_p11 = scmp.ne.s32.totalorder %s933_s27, %s672_s5 }
  0x1a   : > { %p674_p12 = pnand %p673_p11, %p809_p5 }
  0x1b   : > { %227 = vrot.lane.b32.xlu0 %v222_v3, %s736_s6  ;;  %s743_s6 = smov [#allocation2]  }
  0x1c   : > { %p675_p13 = pneg %p674_p12  ;;  %s676_s7 = sshll.u32 %s743_s6, 4  ;;  %s677_s7 = int_to_ptr.vmem [resolvable:$false] %s676_s7 }
  0x1d   : > { %s678_s8 = scalar_lea.vmem %s677_s7, 512  ;;  %p679_p0 = scmp.lt.s32.totalorder %s933_s27, %s677_s7 }
  0x1e   : > { %p680_p1 = scmp.lt.s32.totalorder %s678_s8, %s672_s5 }
  0x20   : > { %p681_p2 = por %p680_p1, %p679_p0 }
  0x22   : > { %p682_p3 = pnand %p681_p2, %p675_p13 }
  0x89   : > { %v226_v4 = vpop.permute.xlu0 %225 }
  0x8a   : > { %v231_v5 = vadd.f32 %v226_v4, %v221_v2 }
  0x8c   : > { %249 = vperm.xlu0 %662, %v231_v5   ;;  %240 = vperm.xlu1 %661, %v231_v5  }
  0x8d   : > { %v228_v6 = vpop.permute.xlu0 %227 }
  0x8e   : > { %v232_v7 = vadd.f32 %v228_v6, %v222_v3 }
  0x90   : > { %245 = vperm.xlu1 %661, %v232_v7  }
  0x94   : > { %663 = vset.pattern.permute.xlu1 %v734_v0 }
  0x95   : > { %253 = vperm.xlu1 %663, %v232_v7  }
 0x107   : > { %v241_v11 = vpop.permute.xlu1 %240  ;;  %v250_v12 = vpop.permute.xlu0 %249 }
 0x108   : > { %v256_v14 = vsel %vm235_vm0, %v241_v11, %v250_v12 }
 0x109   : > { %v265_v15 = vmul.f32 %v587_v10, %v256_v14 }
 0x10b   : > { %v834_v16 = vadd.f32 %v588_v13, %v265_v15  ;;  %v246_v17 = vpop.permute.xlu1 %245 }
 0x10d   : > { %v276_v18 = vand.u32 2147483647, %v834_v16  ;;  %v279_v19 = vand.u32 2139095040, %v834_v16  ;;  %vm278_vm14 = vcmp.lt.s32.totalorder %v834_v16, 0 }
 0x10f   : > { %v280_v20 = vshrl.u32 %v279_v19, 23  ;;  %v283_v23 = vand.u32 8388607, %v276_v18 }
 0x110   : > { %v254_v21 = vpop.permute.xlu1 %253 }
 0x111   : > { %v589_v22 = vadd.s32 4294967169, %v280_v20  ;;  %v257_v24 = vsel %vm235_vm0, %v246_v17, %v254_v21  ;;  %v284_v28 = vor.u32 8388608, %v283_v23  ;;  %vm890_vm0 = vcmp.le.f32.partialorder %v276_v18, 0.7853982 }
 0x112   : > { %v266_v25 = vmul.f32 %v587_v10, %v257_v24 }
 0x113   : > { %v286_v26 = vadd.s32 1, %v589_v22  ;;  %v844_v35 = vshll.u32 %v284_v28, 8 }
 0x114   : > { %v840_v27 = vadd.f32 %v588_v13, %v266_v25 }
 0x115   : > { %vm287_vm1 = vcmp.gt.s32.totalorder %v286_v26, 0 }
 0x116   : > { %v288_v29 = vsel %vm287_vm1, %v286_v26, 0  ;;  %v380_v30 = vand.u32 2147483647, %v840_v27  ;;  %v383_v31 = vand.u32 2139095040, %v840_v27  ;;  %vm382_vm1 = vcmp.lt.s32.totalorder %v840_v27, 0 }
 0x117   : > { %v290_v32 = vand.u32 31, %v288_v29  ;;  %v289_v33 = vshrl.u32 %v288_v29, 5 }
 0x118   : > { %v384_v36 = vshrl.u32 %v383_v31, 23  ;;  %v387_v43 = vand.u32 8388607, %v380_v30 }
 0x119   : > { %v291_v34 = vsub.s32 32, %v290_v32  ;;  %v293_v38 = vshll.u32 %v737_v37, %v290_v32  ;;  %v296_v40 = vshll.u32 %v738_v39, %v290_v32  ;;  %v299_v42 = vshll.u32 %v739_v41, %v290_v32 }
 0x11a   : > { %v302_v48 = vshll.u32 %v740_v46, %v290_v32  ;;  %v305_v51 = vshll.u32 %v741_v49, %v290_v32  ;;  %vm308_vm2 = vcmp.lt.s32.totalorder %v289_v33, 1  ;;  %v593_v57 = vadd.s32 4294967169, %v384_v36 }
 0x11b   : > { %v294_v44 = vshrl.u32 %v738_v39, %v291_v34  ;;  %v297_v45 = vshrl.u32 %v739_v41, %v291_v34  ;;  %v300_v47 = vshrl.u32 %v740_v46, %v291_v34  ;;  %v303_v50 = vshrl.u32 %v741_v49, %v291_v34 }
 0x11c   : > { %v306_v53 = vshrl.u32 %v742_v52, %v291_v34  ;;  %vm309_vm3 = vcmp.lt.s32.totalorder %v289_v33, 2  ;;  %vm311_vm4 = vcmp.lt.s32.totalorder %v289_v33, 4  ;;  %v292_v60 = vshrl.u32 %v737_v37, %v291_v34 }
 0x11d   : > { %v295_v54 = vor.u32 %v294_v44, %v293_v38  ;;  %v298_v55 = vor.u32 %v297_v45, %v296_v40  ;;  %v301_v56 = vor.u32 %v300_v47, %v299_v42  ;;  %v304_v58 = vor.u32 %v303_v50, %v302_v48 }
 0x11e   : > { %v307_v59 = vor.u32 %v306_v53, %v305_v51  ;;  %vm310_vm5 = vcmp.lt.s32.totalorder %v289_v33, 3  ;;  %v390_v2 = vadd.s32 1, %v593_v57  ;;  %v388_v6 = vor.u32 8388608, %v387_v43 }
 0x11f   : > { %v313_v61 = vsel %vm311_vm4, %v301_v56, 2102212464  ;;  %v316_v62 = vsel %vm308_vm2, %v295_v54, %v298_v55  ;;  %v320_v63 = vsel %vm308_vm2, %v298_v55, %v301_v56  ;;  %v317_v0 = vsel %vm311_vm4, %v304_v58, 920167782 }
 0x120   : > { %v321_v1 = vsel %vm311_vm4, %v307_v59, 1326507024  ;;  %v312_v3 = vsel %vm308_vm2, %v292_v60, %v295_v54  ;;  %v318_v4 = vsel %vm310_vm5, %v301_v56, %v317_v0  ;;  %v314_v7 = vsel %vm310_vm5, %v298_v55, %v313_v61 }
 0x121   : > { %v322_v5 = vsel %vm310_vm5, %v304_v58, %v321_v1  ;;  %v319_v8 = vsel %vm309_vm3, %v316_v62, %v318_v4  ;;  %vm391_vm6 = vcmp.gt.s32.totalorder %v390_v2, 0  ;;  %v315_v15 = vsel %vm309_vm3, %v312_v3, %v314_v7 }
 0x122   : > { %v323_v9 = vsel %vm309_vm3, %v320_v63, %v322_v5  ;;  %v860_v12 = vmul.u32.u64.low %v844_v35, %v319_v8  ;;  %v861_v13 = vmul.u32.u64.high %v844_v35, %v319_v8, %v860_v12  ;;  %v392_v14 = vsel %vm391_vm6, %v390_v2, 0 }
 0x123   : > { %v856_v10 = vmul.u32.u64.low %v844_v35, %v323_v9  ;;  %v857_v11 = vmul.u32.u64.high %v844_v35, %v323_v9, %v856_v10  ;;  %v394_v17 = vand.u32 31, %v392_v14  ;;  %v428_v21 = vshll.u32 %v388_v6, 8 }
 0x124   : > { %v334_v19 = vadd.s32 1, %v861_v13  ;;  %v331_v22 = vmul.u32 %v844_v35, %v315_v15  ;;  %v393_v23 = vshrl.u32 %v392_v14, 5  ;;  %vm904_vm2 = vcmp.le.f32.partialorder %v380_v30, 0.7853982 }
 0x125   : > { %vm333_vm7 = vc.u32 %v857_v11, %v860_v12  ;;  %v395_v20 = vsub.s32 32, %v394_v17  ;;  %v397_v24 = vshll.u32 %v737_v37, %v394_v17  ;;  %v400_v25 = vshll.u32 %v738_v39, %v394_v17 }
 0x126   : > { %v335_v26 = vsel %vm333_vm7, %v334_v19, %v861_v13  ;;  %v403_v31 = vshll.u32 %v739_v41, %v394_v17  ;;  %v406_v34 = vshll.u32 %v740_v46, %v394_v17  ;;  %v409_v42 = vshll.u32 %v741_v49, %v394_v17 }
 0x127   : > { %v398_v28 = vshrl.u32 %v738_v39, %v395_v20  ;;  %v401_v29 = vshrl.u32 %v739_v41, %v395_v20  ;;  %v336_v32 = vadd.s32 %v335_v26, %v331_v22  ;;  %v404_v33 = vshrl.u32 %v740_v46, %v395_v20 }
 0x128   : > { %v407_v36 = vshrl.u32 %v741_v49, %v395_v20  ;;  %v410_v43 = vshrl.u32 %v742_v52, %v395_v20  ;;  %v396_v35 = vshrl.u32 %v737_v37, %v395_v20  ;;  %vm412_vm8 = vcmp.lt.s32.totalorder %v393_v23, 1 }
 0x129   : > { %v399_v38 = vor.u32 %v398_v28, %v397_v24  ;;  %v402_v40 = vor.u32 %v401_v29, %v400_v25  ;;  %v337_v44 = vadd.s32 536870912, %v336_v32  ;;  %v405_v45 = vor.u32 %v404_v33, %v403_v31 }
 0x12a   : > { %v408_v47 = vor.u32 %v407_v36, %v406_v34  ;;  %v411_v48 = vor.u32 %v410_v43, %v409_v42  ;;  %vm414_vm9 = vcmp.lt.s32.totalorder %v393_v23, 3  ;;  %vm415_vm10 = vcmp.lt.s32.totalorder %v393_v23, 4 }
 0x12b   : > { %v872_v39 = vshrl.u32 %v337_v44, 30  ;;  %v417_v41 = vsel %vm415_vm10, %v405_v45, 2102212464  ;;  %v420_v50 = vsel %vm412_vm8, %v399_v38, %v402_v40  ;;  %vm413_vm11 = vcmp.lt.s32.totalorder %v393_v23, 2 }
 0x12c   : > { %v421_v51 = vsel %vm415_vm10, %v408_v47, 920167782  ;;  %v424_v53 = vsel %vm412_vm8, %v402_v40, %v405_v45  ;;  %v425_v54 = vsel %vm415_vm10, %v411_v48, 1326507024  ;;  %v416_v52 = vsel %vm412_vm8, %v396_v35, %v399_v38 }
 0x12d   : > { %v422_v46 = vsel %vm414_vm9, %v405_v45, %v421_v51  ;;  %v339_v49 = vshll.u32 %v872_v39, 30  ;;  %v418_v37 = vsel %vm414_vm9, %v402_v40, %v417_v41  ;;  %v426_v56 = vsel %vm414_vm9, %v408_v47, %v425_v54 }
 0x12e   : > { %v423_v55 = vsel %vm413_vm11, %v420_v50, %v422_v46  ;;  %v427_v60 = vsel %vm413_vm11, %v424_v53, %v426_v56  ;;  %v419_v0 = vsel %vm413_vm11, %v416_v52, %v418_v37  ;;  %v332_v13 = vadd.s32 %v860_v12, %v857_v11 }
 0x12f   : > { %v875_v57 = vmul.u32.u64.low %v428_v21, %v423_v55  ;;  %v876_v58 = vmul.u32.u64.high %v428_v21, %v423_v55, %v875_v57  ;;  %v340_v59 = vsub.s32 %v336_v32, %v339_v49  ;;  %v435_v3 = vmul.u32 %v428_v21, %v419_v0  ;;  %v484_v0 = vld [vmem:[%s914_s14] sm:$0xff] }
 0x130   : > { %v878_v61 = vmul.u32.u64.low %v428_v21, %v427_v60  ;;  %v879_v62 = vmul.u32.u64.high %v428_v21, %v427_v60, %v878_v61  ;;  %v362_v11 = vsub.s32 4, %v872_v39  ;;  %vm368_vm6 = vweird.f32 %v834_v16 }
 0x131   : > { %v342_v63 = vsub.s32 0, %v340_v59  ;;  %v438_v1 = vadd.s32 1, %v876_v58  ;;  %vm472_vm10 = vweird.f32 %v840_v27 }
 0x132   : > { %vm437_vm12 = vc.u32 %v879_v62, %v875_v57  ;;  %v436_v43 = vadd.s32 %v875_v57, %v879_v62  ;;  %v363_v45 = vsel %vm278_vm14, %v362_v11, %v872_v39 }
 0x133   : > { %v590_v2 = vmin.u32 %v342_v63, %v340_v59  ;;  %v439_v5 = vsel %vm437_vm12, %v438_v1, %v876_v58  ;;  %v365_v51 = vsel %vm890_vm0, 0, %v363_v45 }
 0x134   : > { %v440_v6 = vadd.s32 %v439_v5, %v435_v3  ;;  %v369_v53 = vadd.s32 3, %v365_v51 }
 0x135   : > { %v344_v4 = vclz %v590_v2 }
 0x136   : > { %v441_v8 = vadd.s32 536870912, %v440_v6  ;;  %v370_v55 = vand.u32 3, %v369_v53 }
 0x137   : > { %v591_v7 = vadd.s32 4294967294, %v344_v4 }
 0x138   : > { %v442_v10 = vshrl.u32 %v441_v8, 30  ;;  %vm375_vm3 = vcmp.eq.s32.totalorder %v370_v55, 2  ;;  %vm372_vm4 = vcmp.eq.s32.totalorder %v370_v55, 0  ;;  %vm371_vm5 = vcmp.lt.s32.totalorder %v370_v55, 2 }
 0x139   : > { %vm592_vm13 = vcmp.lt.s32.totalorder %v591_v7, 0 }
 0x13a   : > { %v347_v9 = vsel %vm592_vm13, 0, %v591_v7  ;;  %v443_v17 = vshll.u32 %v442_v10, 30  ;;  %v466_v39 = vsub.s32 4, %v442_v10 }
 0x13b   : > { %v348_v14 = vsub.s32 32, %v347_v9  ;;  %v352_v15 = vsub.s32 4294967266, %v347_v9  ;;  %v349_v19 = vshll.u32 %v340_v59, %v347_v9 }
 0x13c   : > { %v444_v22 = vsub.s32 %v440_v6, %v443_v17  ;;  %v467_v62 = vsel %vm382_vm1, %v466_v39, %v442_v10 }
 0x13d   : > { %v350_v20 = vshrl.u32 %v332_v13, %v348_v14  ;;  %v353_v21 = vadd.s32 127, %v352_v15  ;;  %v469_v3 = vsel %vm904_vm2, 0, %v467_v62  ;;  %v485_v14 = vld [vmem:[%s914_s14 + $0x8] sm:$0xff] }
 0x13e   : > { %v446_v25 = vsub.s32 0, %v444_v22  ;;  %v473_v6 = vadd.s32 3, %v469_v3 }
 0x13f   : > { %v351_v23 = vor.u32 %v350_v20, %v349_v19  ;;  %v354_v24 = vshll.u32 %v353_v21, 23 }
 0x140   : > { %v594_v28 = vmin.u32 %v446_v25, %v444_v22  ;;  %v474_v7 = vand.u32 3, %v473_v6 }
 0x141   : > { %v355_v26 = vor.u32 4788187, %v354_v24  ;;  %v358_v31 = vcvt.s32.f32 %v351_v23 }
 0x142   : > { %v448_v32 = vclz %v594_v28  ;;  %vm479_vm7 = vcmp.eq.s32.totalorder %v474_v7, 2  ;;  %vm476_vm8 = vcmp.eq.s32.totalorder %v474_v7, 0  ;;  %vm475_vm9 = vcmp.lt.s32.totalorder %v474_v7, 2 }
 0x143   : > { %v356_v29 = vand.u32 2147483647, %v355_v26 }
 0x144   : > { %v595_v34 = vadd.s32 4294967294, %v448_v32 }
 0x145   : > { %v359_v33 = vmul.f32 %v358_v31, %v356_v29 }
 0x146   : > { %vm596_vm15 = vcmp.lt.s32.totalorder %v595_v34, 0 }
 0x147   : > { %v360_v36 = vxor.u32 2147483648, %v359_v33  ;;  %v451_v40 = vsel %vm596_vm15, 0, %v595_v34 }
 0x148   : > { %v452_v44 = vsub.s32 32, %v451_v40  ;;  %v456_v35 = vsub.s32 4294967266, %v451_v40  ;;  %v453_v47 = vshll.u32 %v444_v22, %v451_v40 }
 0x149   : > { %v361_v38 = vsel %vm278_vm14, %v360_v36, %v359_v33 }
 0x14a   : > { %v364_v42 = vsel %vm890_vm0, %v834_v16, %v361_v38  ;;  %v454_v48 = vshrl.u32 %v436_v43, %v452_v44  ;;  %v457_v18 = vadd.s32 127, %v456_v35 }
 0x14b   : > { %664 = vcosq.f32 %v364_v42 }
 0x14c   : > { %666 = vsinq.f32 %v364_v42  ;;  %v455_v41 = vor.u32 %v454_v48, %v453_v47  ;;  %v458_v50 = vshll.u32 %v457_v18, 23 }
 0x14e   : > { %v459_v46 = vor.u32 4788187, %v458_v50  ;;  %v462_v49 = vcvt.s32.f32 %v455_v41 }
 0x150   : > { %v460_v54 = vand.u32 2147483647, %v459_v46 }
 0x152   : > { %v463_v52 = vmul.f32 %v462_v49, %v460_v54 }
 0x154   : > { %v464_v37 = vxor.u32 2147483648, %v463_v52 }
 0x156   : > { %v465_v58 = vsel %vm382_vm1, %v464_v37, %v463_v52 }
 0x157   : > { %v468_v60 = vsel %vm904_vm2, %v840_v27, %v465_v58 }
 0x158   : > { %v665_v56 = vpop.eup %664  ;;  %668 = vcosq.f32 %v468_v60 }
 0x159   : > { %v667_v59 = vpop.eup %666  ;;  %v376_v61 = vxor.u32 2147483648, %v665_v56  ;;  %670 = vsinq.f32 %v468_v60 }
 0x15a   : > { %v373_v30 = vxor.u32 2147483648, %v667_v59 }
 0x15b   : > { %v377_v63 = vsel %vm375_vm3, %v376_v61, %v667_v59 }
 0x15c   : > { %v374_v1 = vsel %vm372_vm4, %v665_v56, %v373_v30 }
 0x15d   : > { %v378_v2 = vsel %vm371_vm5, %v374_v1, %v377_v63 }
 0x15e   : > { %v379_v4 = vsel %vm368_vm6, nan, %v378_v2 }
 0x15f   : > { %v486_v5 = vadd.f32 %v484_v0, %v379_v4 }
 0x161   : > { %488 = vst [vmem:[%s207_s22] sm:$0xff] %v486_v5 }
 0x165   : > { %v669_v8 = vpop.eup %668 }
 0x166   : > { %v671_v9 = vpop.eup %670  ;;  %v480_v10 = vxor.u32 2147483648, %v669_v8 }
 0x167   : > { %v477_v13 = vxor.u32 2147483648, %v671_v9 }
 0x168   : > { %v481_v16 = vsel %vm479_vm7, %v480_v10, %v671_v9 }
 0x169   : > { %v478_v15 = vsel %vm476_vm8, %v669_v8, %v477_v13 }
 0x16a   : > { %v482_v17 = vsel %vm475_vm9, %v478_v15, %v481_v16 }
 0x16b   : > { %v483_v19 = vsel %vm472_vm10, nan, %v482_v17 }
 0x16c   : > { %v487_v20 = vadd.f32 %v485_v14, %v483_v19 }
 0x16e   : > { %489 = vst [vmem:[%s207_s22 + $0x8] sm:$0xff] %v487_v20 }
 0x16f   : > { %685 = shalt.err (!%p682_p3)
}
 0x170   : > { %s686_s9 = scalar_lea.hbm %s931_s30, 256  ;;  %s690_s12 = scalar_lea.hbm %s981_s4, 512 }
 0x171   : > { %p687_p4 = scmp.ne.s32.totalorder %s931_s30, %s686_s9  ;;  %p691_p9 = scmp.lt.s32.totalorder %s931_s30, %s981_s4 }
 0x172   : > { %p692_p10 = scmp.lt.s32.totalorder %s690_s12, %s686_s9 }
 0x173   : > { %p688_p7 = pnand %p687_p4, %p809_p5 }
 0x174   : > { %p693_p11 = por %p692_p10, %p691_p9 }
 0x175   : > { %p689_p8 = pneg %p688_p7 }
 0x177   : > { %p694_p12 = pnand %p693_p11, %p689_p8 }
 0x179   : > { %697 = shalt.err (!%p694_p12)
}
 0x17a   : > { %s744_s20 = smov 128   ;;  %s745_s22 = smov 8  }
 0x17b   : > { %611 = dma.vmem_to_hbm [thread:$0]  (%p809_p5), %s933_s27, 256, %s931_s30, %s937_s19, %s744_s20, %s744_s20, %s745_s22  }
 0x17c PF: > { %p617_p13 = scmp.ge.s32.totalorder %s732_s18, 2  ;;  %s519_s23 = sand.u32 1, %s720_s15  }
 0x17d   : > { %s520_s28 = scalar_lea.sflag [#allocation3], %s519_s23 }
 0x17e   : > { %p614_p0 = pnand %p617_p13, %p813_p6 }
 0x180   : > { %p615_p1 = pneg %p614_p0 }
 0x182   : > { %715 = dma.done.wait (%p615_p1), %s520_s28, 256  }
 0x183   : > { %717 = vsyncadd (%p615_p1), %s520_s28, 4294967040  ;;  %p14_p2 = scmp.ge.s32.totalorder %s796_s21, 4   ;;  %s988_s15 = smov %s724_s16 }
 0x184   : > { %s989_s16 = smov %s728_s17  ;;  %s990_s17 = smov %s807_s24 }
 0x185   : > { %s991_s18 = smov %s796_s21  ;;  %16 = sbr.rel (!%p14_p2) target bundleno = 3 (0x3), region = 74 }
 0x18a   :  { %525 = vsyncpa [#allocation3], 1 }
 0x18b   :  { %527 = vsyncpa [#allocation3 + $0x1], 1 }

</bundles_post_ra>
